<compile_context>
chip_gen: v5e
topology: v5e:2x2
jax: 0.10.0
libtpu: 0.0.40
codegen_flags: <defaults>
</compile_context>

<pallas_src>
import numpy as np
import jax
import jax.numpy as jnp
from jax import lax
from jax.experimental import pallas as pl
from jax.experimental.pallas import tpu as pltpu


# ------------------------- configuration (cfg.*) ----------------------------
BATCH_SIZE = 2
PK_ROWS = 4
PK_COLS = 4
PK_NEIGHBORS = 8
PK_NUM_LSTM_CELLS = 16
PK_DYN_OUT_SIZE = 1

N_PKS = PK_ROWS * PK_COLS
NB = PK_NEIGHBORS
H = PK_NUM_LSTM_CELLS
IN_SIZE = NB + 1                      # dyn (1) + lateral (8)
OUT_SIZE = PK_DYN_OUT_SIZE + NB       # dyn out (1) + lateral out (8)
BN = BATCH_SIZE * N_PKS               # folded batch*pk rows

# ---- lane layout of the packed input state slab, shape (BN, STATE_W) -------
_DH_LO, _DH_HI = 0, 24                # [dyn(1) | h_old(16) | zeros(7)]
_C_LO, _C_HI = 24, 40                 # c_old (16)
_LI_LO, _LI_HI = 40, 48               # pk_lat_in (old) (8)
_LO_LO, _LO_HI = 48, 56               # pk_lat_out (prev step) (8)
STATE_W = 64

# ---- row layout of the packed constant slab, shape (CONST_ROWS, 128) -------
_WDH_R = (0, 24)                      # cols 0:4H   [w_dyn; w_hh; 0-pad]
_WLAT_R = (24, 32)                    # cols 0:4H   w_lat
_B_R = 32                             # cols 0:4H   bias
_WOUT_R = (40, 56)                    # cols 0:128  w_out widened (real cols 0:OUT_SIZE)
_BOUT_R = 56                          # cols 0:128  b_out widened
_KEEP_R = (64, 96)                    # cols 0:NB   (1 - incoming-edge mask), tiled over batch
CONST_ROWS = 96
CONST_W = 128

# ---- lane layout of the packed output slab, shape (BN, OUT_W) ---------------
_Y_LO = 0                             # 0:OUT_SIZE  -> pk_dyn_out | pk_lat_out
_H_LO, _H_HI = 16, 32                 # new lstm_h
_CN_LO, _CN_HI = 32, 48               # new lstm_c
_LIN_LO, _LIN_HI = 48, 56             # new pk_lat_in
OUT_W = 128

DIRECTION_OFFSETS = [(-1, -1), (-1, 0), (-1, 1),
                     (0, -1), (0, 1),
                     (1, -1), (1, 0), (1, 1)]        # dict order of the reference


# --------------------- host-side routing / constant prep ---------------------
def build_routing(rows, cols, batch):
    """Lateral routing structures, exactly mirroring KernelNetwork.__init__."""
    n = rows * cols
    mask = np.zeros((n, NB), dtype=np.float32)          # mask[dst, d] = has incoming edge
    # L[b*n + p, (b*n + q)*NB + d] = 1  iff  q is p's neighbour in direction d
    L = np.zeros((batch * n, batch * n * NB), dtype=np.float32)
    pos0, coming_from, going_to = [], [], []
    for r in range(rows):
        for c in range(cols):
            p = r * cols + c
            for d, (dr, dc) in enumerate(DIRECTION_OFFSETS):
                nr, nc = r + dr, c + dc
                if 0 <= nr < rows and 0 <= nc < cols:
                    q = nr * cols + nc
                    mask[p, d] = 1.0
                    pos0.append(p)
                    coming_from.append(q)
                    going_to.append(d)
                    for b in range(batch):
                        L[b * n + p, (b * n + q) * NB + d] = 1.0
    keep = np.tile(1.0 - mask, (batch, 1))               # (batch*n, NB)
    return (L, keep,
            np.asarray(pos0, np.int32),
            np.asarray(coming_from, np.int32),
            np.asarray(going_to, np.int32))


def build_const_slab(params, keep):
    """Pack all weights/biases/masks into one lane-padded (96,128) f32 operand."""
    w_dyn, w_lat, w_hh, b, w_out, b_out = params
    slab = np.zeros((CONST_ROWS, CONST_W), dtype=np.float32)
    slab[0, 0:4 * H] = np.asarray(w_dyn)[0]              # row 0: dyn weight
    slab[1:1 + H, 0:4 * H] = np.asarray(w_hh)            # rows 1:17: hidden weight
    slab[_WLAT_R[0]:_WLAT_R[1], 0:4 * H] = np.asarray(w_lat)
    slab[_B_R, 0:4 * H] = np.asarray(b)[0]
    slab[_WOUT_R[0]:_WOUT_R[1], 0:OUT_SIZE] = np.asarray(w_out)
    slab[_BOUT_R, 0:OUT_SIZE] = np.asarray(b_out)[0]
    slab[_KEEP_R[0]:_KEEP_R[1], 0:NB] = keep
    return jnp.asarray(slab)


# ------------------------------ Pallas kernel --------------------------------
def _kernel_network_kernel(state_ref, L_ref, const_ref, out_ref):
    # packed per-PK state, rows = (batch, pk) flattened
    x_dh = state_ref[:, _DH_LO:_DH_HI]          # (BN, 24)  [dyn | h_old | 0]
    c_old = state_ref[:, _C_LO:_C_HI]           # (BN, 16)
    lat_in_old = state_ref[:, _LI_LO:_LI_HI]    # (BN, 8)
    lat_out = state_ref[:, _LO_LO:_LO_HI]       # (BN, 8)

    # ---- (1) lateral routing: single MXU matmul via diagonal expansion ------
    # lat_expand[(bq)*NB + d', d] = lat_out[bq, d'] * (d == d')
    eye = (lax.broadcasted_iota(jnp.int32, (NB, NB), 0)
           == lax.broadcasted_iota(jnp.int32, (NB, NB), 1)).astype(jnp.float32)
    lat_expand = (lat_out[:, :, None] * eye[None, :, :]).reshape(BN * NB, NB)
    gathered = jnp.dot(L_ref[...], lat_expand,
                       preferred_element_type=jnp.float32)          # (BN, 8)
    keep = const_ref[_KEEP_R[0]:_KEEP_R[1], 0:NB]                    # (BN, 8)
    lat_in_new = gathered + keep * lat_in_old                        # routed lateral input

    # ---- (2)+(3) shared-weight LSTM cell over all PKs (fused matmuls) -------
    w_dh = const_ref[_WDH_R[0]:_WDH_R[1], 0:4 * H]    # (24, 4H) [w_dyn; w_hh; 0]
    w_lat = const_ref[_WLAT_R[0]:_WLAT_R[1], 0:4 * H]  # (8, 4H)
    bias = const_ref[_B_R:_B_R + 1, 0:4 * H]           # (1, 4H)
    gates = (jnp.dot(x_dh, w_dh, preferred_element_type=jnp.float32)
             + jnp.dot(lat_in_new, w_lat, preferred_element_type=jnp.float32)
             + bias)                                                 # (BN, 4H)

    i_g = jax.nn.sigmoid(gates[:, 0 * H:1 * H])
    f_g = jax.nn.sigmoid(gates[:, 1 * H:2 * H])
    g_g = jnp.tanh(gates[:, 2 * H:3 * H])
    o_g = jax.nn.sigmoid(gates[:, 3 * H:4 * H])
    c_new = f_g * c_old + i_g * g_g
    h_new = o_g * jnp.tanh(c_new)

    # ---- output head (widened to 128 lanes so the slab store is unmasked) ---
    w_out_wide = const_ref[_WOUT_R[0]:_WOUT_R[1], :]    # (16, 128)
    b_out_wide = const_ref[_BOUT_R:_BOUT_R + 1, :]      # (1, 128)
    y_wide = jnp.tanh(jnp.dot(h_new, w_out_wide,
                              preferred_element_type=jnp.float32) + b_out_wide)

    # ---- single lane-dense output slab --------------------------------------
    out_ref[...] = y_wide                               # lanes 0:OUT_SIZE = y, rest 0
    out_ref[:, _H_LO:_H_HI] = h_new
    out_ref[:, _CN_LO:_CN_HI] = c_new
    out_ref[:, _LIN_LO:_LIN_HI] = lat_in_new


# --------------------------------- wrapper -----------------------------------
@jax.jit
def kernel_network_forward(dyn_in, lat_in, lat_out, lstm_h, lstm_c, L, const_slab):
    """One KernelNetwork.forward step. dyn_in: (B, N) f32."""
    B, N = dyn_in.shape
    bn = B * N

    # pack all per-PK state into one (BN, 64) slab (one input DMA)
    state = jnp.concatenate([
        dyn_in.reshape(bn, 1),
        lstm_h.reshape(bn, H),
        jnp.zeros((bn, _DH_HI - 1 - H), jnp.float32),
        lstm_c.reshape(bn, H),
        lat_in.reshape(bn, NB),
        lat_out.reshape(bn, NB),
        jnp.zeros((bn, STATE_W - _LO_HI), jnp.float32),
    ], axis=1)

    out = pl.pallas_call(
        _kernel_network_kernel,
        out_shape=jax.ShapeDtypeStruct((bn, OUT_W), jnp.float32),
        in_specs=[pl.BlockSpec(memory_space=pltpu.MemorySpace.VMEM)] * 3,
        out_specs=pl.BlockSpec(memory_space=pltpu.MemorySpace.VMEM),
    )(state, L, const_slab)

    y = out[:, _Y_LO:_Y_LO + OUT_SIZE].reshape(B, N, OUT_SIZE)
    pk_dyn_out = y[:, :, :PK_DYN_OUT_SIZE]
    pk_lat_out = y[:, :, PK_DYN_OUT_SIZE:]
    h_new = out[:, _H_LO:_H_HI].reshape(B, N, H)
    c_new = out[:, _CN_LO:_CN_HI].reshape(B, N, H)
    lat_in_new = out[:, _LIN_LO:_LIN_HI].reshape(B, N, NB)
    return pk_dyn_out, pk_lat_out, h_new, c_new, lat_in_new


# ------------------------------ pure-JAX reference ---------------------------
def reference_forward(dyn_in, lat_in, lat_out, h, c,
                      pos0, coming_from, going_to, params):
    w_dyn, w_lat, w_hh, b, w_out, b_out = params
    lat_routed = lat_in.at[:, pos0, going_to].set(lat_out[:, coming_from, going_to])
    x = jnp.concatenate([dyn_in[..., None], lat_routed], axis=2)    # (B, N, 9)
    w_x = jnp.concatenate([w_dyn, w_lat], axis=0)                   # (9, 4H)
    gates = (jnp.einsum('bni,ij->bnj', x, w_x)
             + jnp.einsum('bnh,hj->bnj', h, w_hh) + b[0])
    i_g = jax.nn.sigmoid(gates[..., 0 * H:1 * H])
    f_g = jax.nn.sigmoid(gates[..., 1 * H:2 * H])
    g_g = jnp.tanh(gates[..., 2 * H:3 * H])
    o_g = jax.nn.sigmoid(gates[..., 3 * H:4 * H])
    c_new = f_g * c + i_g * g_g
    h_new = o_g * jnp.tanh(c_new)
    y = jnp.tanh(jnp.einsum('bnh,ho->bno', h_new, w_out) + b_out[0])
    return (y[:, :, :PK_DYN_OUT_SIZE], y[:, :, PK_DYN_OUT_SIZE:],
            h_new, c_new, lat_routed)


# ----------------------------------- main -------------------------------------
if __name__ == "__main__":
    B, N = BATCH_SIZE, N_PKS

    key = jax.random.PRNGKey(0)
    ks = jax.random.split(key, 10)
    bound = 1.0 / np.sqrt(H)
    w_x = jax.random.uniform(ks[0], (IN_SIZE, 4 * H), jnp.float32, -bound, bound)
    w_dyn, w_lat = w_x[:1], w_x[1:]
    w_hh = jax.random.uniform(ks[1], (H, 4 * H), jnp.float32, -bound, bound)
    b = jax.random.uniform(ks[2], (1, 4 * H), jnp.float32, -bound, bound)
    w_out = jax.random.uniform(ks[3], (H, OUT_SIZE), jnp.float32, -bound, bound)
    b_out = jax.random.uniform(ks[4], (1, OUT_SIZE), jnp.float32, -bound, bound)
    params = (w_dyn, w_lat, w_hh, b, w_out, b_out)

    # state tensors (self.tensors.*) — initialized deterministically
    dyn_in = jax.random.normal(ks[5], (B, N), jnp.float32)
    lat_in = 0.1 * jax.random.normal(ks[6], (B, N, NB), jnp.float32)
    lat_out = 0.1 * jax.random.normal(ks[7], (B, N, NB), jnp.float32)
    lstm_h = 0.1 * jax.random.normal(ks[8], (B, N, H), jnp.float32)
    lstm_c = 0.1 * jax.random.normal(ks[9], (B, N, H), jnp.float32)

    L_np, keep_np, pos0, coming_from, going_to = build_routing(PK_ROWS, PK_COLS, B)
    Lmat = jnp.asarray(L_np)
    const_slab = build_const_slab(params, keep_np)

    outs = kernel_network_forward(dyn_in, lat_in, lat_out, lstm_h, lstm_c,
                                  Lmat, const_slab)
    outs = jax.block_until_ready(outs)

    refs = reference_forward(dyn_in, lat_in, lat_out, lstm_h, lstm_c,
                             jnp.asarray(pos0), jnp.asarray(coming_from),
                             jnp.asarray(going_to), params)

    # NOTE: tolerance kept at 1e-2 because in-kernel / reference matmuls use
    # the MXU's default (bf16-pass) precision for f32 operands.
    for got, want in zip(outs, refs):
        np.testing.assert_allclose(np.asarray(got), np.asarray(want),
                                   rtol=1e-2, atol=1e-2)

    print("KERNEL_OK")
</pallas_src>

<mosaic_0001>
module attributes {stable_mosaic.version = 11 : i64} {
  func.func @_kernel_network_kernel(%arg0: memref<32x64xf32, #tpu.memory_space<vmem>>, %arg1: memref<32x256xf32, #tpu.memory_space<vmem>>, %arg2: memref<96x128xf32, #tpu.memory_space<vmem>>, %arg3: memref<32x128xf32, #tpu.memory_space<vmem>>) attributes {dimension_semantics = [], scalar_prefetch = 0 : i64, scratch_operands = 0 : i64, tpu.core_type = #tpu.core_type<tc>} {
    %c0 = arith.constant 0 : index
    %c0_0 = arith.constant 0 : index
    %0 = vector.load %arg0[%c0, %c0_0] : memref<32x64xf32, #tpu.memory_space<vmem>>, vector<32x24xf32>
    %c0_1 = arith.constant 0 : index
    %c24 = arith.constant 24 : index
    %1 = vector.load %arg0[%c0_1, %c24] : memref<32x64xf32, #tpu.memory_space<vmem>>, vector<32x16xf32>
    %c0_2 = arith.constant 0 : index
    %c40 = arith.constant 40 : index
    %2 = vector.load %arg0[%c0_2, %c40] : memref<32x64xf32, #tpu.memory_space<vmem>>, vector<32x8xf32>
    %c0_3 = arith.constant 0 : index
    %c48 = arith.constant 48 : index
    %3 = vector.load %arg0[%c0_3, %c48] : memref<32x64xf32, #tpu.memory_space<vmem>>, vector<32x8xf32>
    %4 = tpu.iota {dimensions = array<i32: 0>} : vector<8x8xi32>
    %5 = tpu.iota {dimensions = array<i32: 1>} : vector<8x8xi32>
    %6 = arith.cmpi eq, %4, %5 : vector<8x8xi32>
    %7 = arith.extui %6 : vector<8x8xi1> to vector<8x8xi32>
    %8 = arith.sitofp %7 : vector<8x8xi32> to vector<8x8xf32>
    %9 = vector.shape_cast %3 : vector<32x8xf32> to vector<32x8x1xf32>
    %10 = vector.shape_cast %8 : vector<8x8xf32> to vector<1x8x8xf32>
    %11 = vector.broadcast %9 : vector<32x8x1xf32> to vector<32x8x8xf32>
    %12 = vector.broadcast %10 : vector<1x8x8xf32> to vector<32x8x8xf32>
    %13 = arith.mulf %11, %12 : vector<32x8x8xf32>
    %14 = vector.shape_cast %13 : vector<32x8x8xf32> to vector<256x8xf32>
    %c0_4 = arith.constant 0 : index
    %c0_5 = arith.constant 0 : index
    %15 = vector.load %arg1[%c0_4, %c0_5] : memref<32x256xf32, #tpu.memory_space<vmem>>, vector<32x256xf32>
    %cst = arith.constant dense<0.000000e+00> : vector<32x8xf32>
    %16 = tpu.matmul %15, %14, %cst {dimension_numbers = #tpu.dot_dimension_numbers<[1], [0], [0], [1], [0, 0, 1, 1], [], []>} : vector<32x256xf32>, vector<256x8xf32>, vector<32x8xf32> -> vector<32x8xf32>
    %c64 = arith.constant 64 : index
    %c0_6 = arith.constant 0 : index
    %17 = vector.load %arg2[%c64, %c0_6] : memref<96x128xf32, #tpu.memory_space<vmem>>, vector<32x8xf32>
    %18 = arith.mulf %17, %2 : vector<32x8xf32>
    %19 = arith.addf %16, %18 : vector<32x8xf32>
    %c0_7 = arith.constant 0 : index
    %c0_8 = arith.constant 0 : index
    %20 = vector.load %arg2[%c0_7, %c0_8] : memref<96x128xf32, #tpu.memory_space<vmem>>, vector<24x64xf32>
    %c24_9 = arith.constant 24 : index
    %c0_10 = arith.constant 0 : index
    %21 = vector.load %arg2[%c24_9, %c0_10] : memref<96x128xf32, #tpu.memory_space<vmem>>, vector<8x64xf32>
    %c32 = arith.constant 32 : index
    %c0_11 = arith.constant 0 : index
    %22 = vector.load %arg2[%c32, %c0_11] : memref<96x128xf32, #tpu.memory_space<vmem>>, vector<1x64xf32>
    %cst_12 = arith.constant dense<0.000000e+00> : vector<32x64xf32>
    %23 = tpu.matmul %0, %20, %cst_12 {dimension_numbers = #tpu.dot_dimension_numbers<[1], [0], [0], [1], [0, 0, 1, 1], [], []>} : vector<32x24xf32>, vector<24x64xf32>, vector<32x64xf32> -> vector<32x64xf32>
    %cst_13 = arith.constant dense<0.000000e+00> : vector<32x64xf32>
    %24 = tpu.matmul %19, %21, %cst_13 {dimension_numbers = #tpu.dot_dimension_numbers<[1], [0], [0], [1], [0, 0, 1, 1], [], []>} : vector<32x8xf32>, vector<8x64xf32>, vector<32x64xf32> -> vector<32x64xf32>
    %25 = arith.addf %23, %24 : vector<32x64xf32>
    %26 = vector.broadcast %22 : vector<1x64xf32> to vector<32x64xf32>
    %27 = arith.addf %25, %26 : vector<32x64xf32>
    %28 = vector.extract_strided_slice %27 {offsets = [0, 0], sizes = [32, 16], strides = [1, 1]} : vector<32x64xf32> to vector<32x16xf32>
    %29 = arith.negf %28 : vector<32x16xf32>
    %30 = math.exp %29 : vector<32x16xf32>
    %cst_14 = arith.constant 1.000000e+00 : f32
    %31 = vector.broadcast %cst_14 : f32 to vector<32x16xf32>
    %32 = arith.addf %31, %30 : vector<32x16xf32>
    %33 = arith.divf %31, %32 : vector<32x16xf32>
    %34 = vector.extract_strided_slice %27 {offsets = [0, 16], sizes = [32, 16], strides = [1, 1]} : vector<32x64xf32> to vector<32x16xf32>
    %35 = arith.negf %34 : vector<32x16xf32>
    %36 = math.exp %35 : vector<32x16xf32>
    %cst_15 = arith.constant 1.000000e+00 : f32
    %37 = vector.broadcast %cst_15 : f32 to vector<32x16xf32>
    %38 = arith.addf %37, %36 : vector<32x16xf32>
    %39 = arith.divf %37, %38 : vector<32x16xf32>
    %40 = vector.extract_strided_slice %27 {offsets = [0, 32], sizes = [32, 16], strides = [1, 1]} : vector<32x64xf32> to vector<32x16xf32>
    %41 = math.tanh %40 : vector<32x16xf32>
    %42 = vector.extract_strided_slice %27 {offsets = [0, 48], sizes = [32, 16], strides = [1, 1]} : vector<32x64xf32> to vector<32x16xf32>
    %43 = arith.negf %42 : vector<32x16xf32>
    %44 = math.exp %43 : vector<32x16xf32>
    %cst_16 = arith.constant 1.000000e+00 : f32
    %45 = vector.broadcast %cst_16 : f32 to vector<32x16xf32>
    %46 = arith.addf %45, %44 : vector<32x16xf32>
    %47 = arith.divf %45, %46 : vector<32x16xf32>
    %48 = arith.mulf %39, %1 : vector<32x16xf32>
    %49 = arith.mulf %33, %41 : vector<32x16xf32>
    %50 = arith.addf %48, %49 : vector<32x16xf32>
    %51 = math.tanh %50 : vector<32x16xf32>
    %52 = arith.mulf %47, %51 : vector<32x16xf32>
    %c40_17 = arith.constant 40 : index
    %c0_18 = arith.constant 0 : index
    %53 = vector.load %arg2[%c40_17, %c0_18] : memref<96x128xf32, #tpu.memory_space<vmem>>, vector<16x128xf32>
    %c56 = arith.constant 56 : index
    %c0_19 = arith.constant 0 : index
    %54 = vector.load %arg2[%c56, %c0_19] : memref<96x128xf32, #tpu.memory_space<vmem>>, vector<1x128xf32>
    %cst_20 = arith.constant dense<0.000000e+00> : vector<32x128xf32>
    %55 = tpu.matmul %52, %53, %cst_20 {dimension_numbers = #tpu.dot_dimension_numbers<[1], [0], [0], [1], [0, 0, 1, 1], [], []>} : vector<32x16xf32>, vector<16x128xf32>, vector<32x128xf32> -> vector<32x128xf32>
    %56 = vector.broadcast %54 : vector<1x128xf32> to vector<32x128xf32>
    %57 = arith.addf %55, %56 : vector<32x128xf32>
    %58 = math.tanh %57 : vector<32x128xf32>
    %c0_21 = arith.constant 0 : index
    %c0_22 = arith.constant 0 : index
    %59 = vector.load %arg3[%c0_21, %c0_22] : memref<32x128xf32, #tpu.memory_space<vmem>>, vector<32x128xf32>
    tpu.vector_store %arg3[%c0_21, %c0_22], %58 {strides = array<i32>} : memref<32x128xf32, #tpu.memory_space<vmem>>, vector<32x128xf32>,
    %c0_23 = arith.constant 0 : index
    %c16 = arith.constant 16 : index
    %60 = vector.load %arg3[%c0_23, %c16] : memref<32x128xf32, #tpu.memory_space<vmem>>, vector<32x16xf32>
    tpu.vector_store %arg3[%c0_23, %c16], %52 {strides = array<i32>} : memref<32x128xf32, #tpu.memory_space<vmem>>, vector<32x16xf32>,
    %c0_24 = arith.constant 0 : index
    %c32_25 = arith.constant 32 : index
    %61 = vector.load %arg3[%c0_24, %c32_25] : memref<32x128xf32, #tpu.memory_space<vmem>>, vector<32x16xf32>
    tpu.vector_store %arg3[%c0_24, %c32_25], %50 {strides = array<i32>} : memref<32x128xf32, #tpu.memory_space<vmem>>, vector<32x16xf32>,
    %c0_26 = arith.constant 0 : index
    %c48_27 = arith.constant 48 : index
    %62 = vector.load %arg3[%c0_26, %c48_27] : memref<32x128xf32, #tpu.memory_space<vmem>>, vector<32x8xf32>
    tpu.vector_store %arg3[%c0_26, %c48_27], %19 {strides = array<i32>} : memref<32x128xf32, #tpu.memory_space<vmem>>, vector<32x8xf32>,
    return
  }
}

</mosaic_0001>

<bundles_post_ra>
// kernel: kernel_network_forward.1
= control target key start
LH: loop header
LB: loop body
LE: loop exit
PB: predicated region body
PF: predicated region fallthrough
CT: control target
= control target key end

     0   :  { %v18_v0 = vlaneseq  ;;  %v814_v42 = vmov 0.0   ;;  %vm376_vm1 = vcmask 64512   ;;  %vm418_vm2 = vcmask 195584   ;;  %s815_s25 = smov 96   ;;  %s816_s26 = smov 120   ;;  %s1119_s0 = inlined_call_operand.vmem [shape: f32[32,64], index: 0, kind: input, shape index: {}]   ;;  %s1120_s2 = inlined_call_operand.vmem [shape: f32[96,128], index: 2, kind: input, shape index: {}]   ;;  %s1121_s1 = inlined_call_operand.vmem [shape: f32[32,256], index: 1, kind: input, shape index: {}]   ;;  %s1122_s3 = inlined_call_operand.vmem [shape: f32[32,128], index: 3, kind: output, shape index: {}]  }
   0x1   :  { %v851_v4 = vld [vmem:[%s1119_s0 + $0x18] sm:$0xff]  ;;  %v856_v5 = vld [vmem:[%s1119_s0 + $0x8] sm:$0xff]  ;;  %v876_v21 = vld [vmem:[%s1119_s0] sm:$0xff]  ;;  %s817_s27 = smov 16   ;;  %s818_s28 = smov 32  }
   0x2   :  { %v841_v1 = vshrl.u32 %v18_v0, 7  ;;  %v843_v2 = vand.u32 127, %v18_v0  ;;  %v242_v6 = vperm.slane %v851_v4, 7  ;;  %v235_v7 = vperm.slane %v851_v4, 6  ;;  %v884_v25 = vld [vmem:[%s1119_s0 + $0x10] sm:$0xff]  ;;  %s813_s0 = smov 88  }
   0x3   :  { %v130_v8 = vperm.slane %v856_v5, 7  ;;  %v116_v9 = vperm.slane %v856_v5, 5  ;;  %v109_v10 = vperm.slane %v856_v5, 4  ;;  %v123_v11 = vperm.slane %v856_v5, 6  ;;  %s819_s29 = smov 80   ;;  %s820_s30 = smov 48  }
   0x4   :  { %v28_v3 = vadd.s32 48, %v841_v1  ;;  %vm22_vm0 = vcmp.eq.s32.totalorder %v841_v1, %v843_v2  ;;  %v221_v12 = vperm.slane %v851_v4, 4  ;;  %v102_v13 = vperm.slane %v856_v5, 3 }
   0x5   :  { %v228_v14 = vperm.slane %v851_v4, 5  ;;  %v214_v15 = vperm.slane %v851_v4, 3  ;;  %v88_v16 = vperm.slane %v856_v5, 1  ;;  %v95_v17 = vperm.slane %v856_v5, 2 }
   0x6   :  { %770 = vset.pattern.permute.xlu2 %v28_v3  ;;  %769 = vset.pattern.permute.xlu1 %v28_v3  ;;  %v200_v18 = vperm.slane %v851_v4, 1  ;;  %v81_v19 = vperm.slane %v856_v5, 0  ;;  %v207_v20 = vperm.slane %v851_v4, 2  ;;  %v193_v22 = vperm.slane %v851_v4, 0 }
   0x7   :  { %768 = vset.pattern.permute.xlu0 %v28_v3  ;;  %v67_v23 = vperm.slane %v876_v21, 6  ;;  %v74_v24 = vperm.slane %v876_v21, 7  ;;  %v179_v26 = vperm.slane %v884_v25, 6  ;;  %v60_v27 = vperm.slane %v876_v21, 5 }
   0x8   :  { %v186_v28 = vperm.slane %v884_v25, 7  ;;  %v172_v29 = vperm.slane %v884_v25, 5  ;;  %v46_v30 = vperm.slane %v876_v21, 3  ;;  %v53_v31 = vperm.slane %v876_v21, 4 }
   0x9   :  { %v158_v32 = vperm.slane %v884_v25, 3  ;;  %v39_v33 = vperm.slane %v876_v21, 2  ;;  %v165_v34 = vperm.slane %v884_v25, 4  ;;  %v151_v35 = vperm.slane %v884_v25, 2 }
   0xa   :  { %v25_v36 = vperm.slane %v876_v21, 0  ;;  %v32_v37 = vperm.slane %v876_v21, 1  ;;  %v137_v38 = vperm.slane %v884_v25, 0  ;;  %v144_v39 = vperm.slane %v884_v25, 1 }
   0xb   :  { %v907_v43 = vsel %vm22_vm0, 1.0, %v814_v42  ;;  %v281_v42 = vld [vmem:[%s1121_s1] sm:$0xff] }
   0xe   :  { %247 = vperm.xlu1 %769, %v242_v6   ;;  %240 = vperm.xlu2 %770, %v235_v7  }
   0xf   :  { %135 = vperm.xlu0 %768, %v130_v8  }
  0x16   :  { %121 = vperm.xlu1 %769, %v116_v9   ;;  %114 = vperm.xlu2 %770, %v109_v10  }
  0x17   :  { %128 = vperm.xlu0 %768, %v123_v11  }
  0x1e   :  { %226 = vperm.xlu2 %770, %v221_v12   ;;  %107 = vperm.xlu1 %769, %v102_v13  }
  0x1f   :  { %233 = vperm.xlu0 %768, %v228_v14  }
  0x26   :  { %219 = vperm.xlu1 %769, %v214_v15   ;;  %93 = vperm.xlu2 %770, %v88_v16  }
  0x27   :  { %100 = vperm.xlu0 %768, %v95_v17  }
  0x2e   :  { %205 = vperm.xlu2 %770, %v200_v18   ;;  %86 = vperm.xlu1 %769, %v81_v19  }
  0x2f   :  { %212 = vperm.xlu0 %768, %v207_v20  }
  0x36   :  { %198 = vperm.xlu1 %769, %v193_v22   ;;  %72 = vperm.xlu2 %770, %v67_v23  }
  0x37   :  { %79 = vperm.xlu0 %768, %v74_v24  }
  0x3e   :  { %184 = vperm.xlu2 %770, %v179_v26   ;;  %65 = vperm.xlu1 %769, %v60_v27  }
  0x3f   :  { %191 = vperm.xlu0 %768, %v186_v28  }
  0x46   :  { %177 = vperm.xlu1 %769, %v172_v29   ;;  %51 = vperm.xlu2 %770, %v46_v30  }
  0x47   :  { %58 = vperm.xlu0 %768, %v53_v31  }
  0x4e   :  { %163 = vperm.xlu2 %770, %v158_v32   ;;  %44 = vperm.xlu1 %769, %v39_v33  }
  0x4f   :  { %170 = vperm.xlu0 %768, %v165_v34  }
  0x56   :  { %156 = vperm.xlu1 %769, %v151_v35   ;;  %30 = vperm.xlu2 %770, %v25_v36  }
  0x57   :  { %37 = vperm.xlu0 %768, %v32_v37  }
  0x5e   :  { %142 = vperm.xlu1 %769, %v137_v38   ;;  %299 = vrot.lane.b32.xlu2 %v856_v5, %s813_s0 }
  0x5f   :  { %149 = vperm.xlu0 %768, %v144_v39  }
  0x66   :  { %303 = vrot.lane.b32.xlu1 %v851_v4, %s813_s0  ;;  %297 = vrot.lane.b32.xlu2 %v876_v21, %s813_s0 }
  0x67   :  { %301 = vrot.lane.b32.xlu0 %v884_v25, %s813_s0 }
  0x68   :  { %v241_v40 = vpop.permute.xlu2 %240 }
  0x69   :  { %v279_v45 = vmul.f32 %v907_v43, %v241_v40 }
  0x70   :  { %v115_v41 = vpop.permute.xlu2 %114 }
  0x71   :  { %v261_v55 = vmul.f32 %v907_v43, %v115_v41 }
  0x78   :  { %v227_v49 = vpop.permute.xlu2 %226 }
  0x79   :  { %v277_v60 = vmul.f32 %v907_v43, %v227_v49  ;;  %v283_v49 = vld [vmem:[%s1121_s1 + $0x10] sm:$0xff] }
  0x80   :  { %v248_v44 = vpop.permute.xlu1 %247  ;;  %v94_v54 = vpop.permute.xlu2 %93 }
  0x81   :  { %v136_v46 = vpop.permute.xlu0 %135  ;;  %v280_v47 = vmul.f32 %v907_v43, %v248_v44  ;;  %v258_v2 = vmul.f32 %v907_v43, %v94_v54  ;;  %v374_v54 = vld [vmem:[%s1120_s2 + $0x18] sm:$0xff] }
  0x82   :  { %v264_v48 = vmul.f32 %v907_v43, %v136_v46  ;;  %404 = vmatpush.msra.mxu2 %v374_v54  ;;  %759 = vmatpush.msra.mxu3 %v374_v54 }
  0x83   :  { %342 = vmatpush.msra.mxu1 %v280_v47 }
  0x84   :  { %313 = vmatpush.msra.mxu0 %v264_v48  ;;  %v282_v48 = vld [vmem:[%s1121_s1 + $0x8] sm:$0xff] }
  0x85   :  { %343 = vmatpush.msra.mxu1 %v279_v45 }
  0x88   :  { %v122_v50 = vpop.permute.xlu1 %121  ;;  %v206_v61 = vpop.permute.xlu2 %205 }
  0x89   :  { %v129_v51 = vpop.permute.xlu0 %128  ;;  %v262_v53 = vmul.f32 %v907_v43, %v122_v50  ;;  %v274_v10 = vmul.f32 %v907_v43, %v206_v61  ;;  %v284_v50 = vld [vmem:[%s1121_s1 + $0x18] sm:$0xff] }
  0x8a   :  { %v263_v52 = vmul.f32 %v907_v43, %v129_v51  ;;  %v286_v51 = vld [vmem:[%s1121_s1 + $0x28] sm:$0xff] }
  0x8c   :  { %314 = vmatpush.msra.mxu0 %v263_v52  ;;  %v287_v52 = vld [vmem:[%s1121_s1 + $0x30] sm:$0xff] }
  0x8e   :  { %315 = vmatpush.msra.mxu0 %v262_v53  ;;  %v288_v53 = vld [vmem:[%s1121_s1 + $0x38] sm:$0xff] }
  0x90   :  { %316 = vmatpush.msra.mxu0 %v261_v55  ;;  %v108_v56 = vpop.permute.xlu1 %107  ;;  %v73_v6 = vpop.permute.xlu2 %72  ;;  %v373_v55 = vld [vmem:[%s1120_s2 + $0x10] sm:$0xff] }
  0x91   :  { %v234_v57 = vpop.permute.xlu0 %233  ;;  %v260_v58 = vmul.f32 %v907_v43, %v108_v56  ;;  %v255_v16 = vmul.f32 %v907_v43, %v73_v6  ;;  %440 = vmatpush.msrb.mxu3 %v373_v55 }
  0x92   :  { %v278_v59 = vmul.f32 %v907_v43, %v234_v57  ;;  %v372_v57 = vld [vmem:[%s1120_s2 + $0x8] sm:$0xff] }
  0x93   :  { %317 = vmatpush.msra.mxu0 %v260_v58  ;;  %441 = vmatpush.msrb.mxu3 %v372_v57  ;;  %v289_v58 = vld [vmem:[%s1120_s2 + $0x40] sm:$0xff] }
  0x94   :  { %344 = vmatpush.msra.mxu1 %v278_v59 }
  0x96   :  { %345 = vmatpush.msra.mxu1 %v277_v60 }
  0x98   :  { %v220_v62 = vpop.permute.xlu1 %219  ;;  %v185_v15 = vpop.permute.xlu2 %184 }
  0x99   :  { %v276_v63 = vmul.f32 %v907_v43, %v220_v62  ;;  %v101_v0 = vpop.permute.xlu0 %100  ;;  %v271_v22 = vmul.f32 %v907_v43, %v185_v15  ;;  %v371_v62 = vld [vmem:[%s1120_s2] sm:$0xff]  ;;  %v292_v15 = vld [vmem:[%s1120_s2 + $0x58] sm:$0xff] }
  0x9a   :  { %v259_v1 = vmul.f32 %v907_v43, %v101_v0  ;;  %442 = vmatpush.msrb.mxu3 %v371_v62  ;;  %v290_v0 = vld [vmem:[%s1120_s2 + $0x48] sm:$0xff] }
  0x9b   :  { %346 = vmatpush.msra.mxu1 %v276_v63 }
  0x9c   :  { %318 = vmatpush.msra.mxu0 %v259_v1 }
  0x9e   :  { %319 = vmatpush.msra.mxu0 %v258_v2 }
  0xa0   :  { %v87_v3 = vpop.permute.xlu1 %86  ;;  %v52_v23 = vpop.permute.xlu2 %51 }
  0xa1   :  { %v213_v7 = vpop.permute.xlu0 %212  ;;  %v257_v8 = vmul.f32 %v907_v43, %v87_v3  ;;  %v252_v29 = vmul.f32 %v907_v43, %v52_v23 }
  0xa2   :  { %v275_v9 = vmul.f32 %v907_v43, %v213_v7 }
  0xa3   :  { %320 = vmatpush.msra.mxu0 %v257_v8  ;;  %v291_v8 = vld [vmem:[%s1120_s2 + $0x50] sm:$0xff] }
  0xa4   :  { %347 = vmatpush.msra.mxu1 %v275_v9 }
  0xa6   :  { %348 = vmatpush.msra.mxu1 %v274_v10 }
  0xa8   :  { %v199_v11 = vpop.permute.xlu1 %198  ;;  %v164_v30 = vpop.permute.xlu2 %163 }
  0xa9   :  { %v273_v12 = vmul.f32 %v907_v43, %v199_v11  ;;  %v80_v13 = vpop.permute.xlu0 %79  ;;  %v268_v35 = vmul.f32 %v907_v43, %v164_v30 }
  0xaa   :  { %v256_v14 = vmul.f32 %v907_v43, %v80_v13 }
  0xab   :  { %349 = vmatpush.msra.mxu1 %v273_v12 }
  0xac   :  { %321 = vmatpush.msra.mxu0 %v256_v14 }
  0xae   :  { %322 = vmatpush.msra.mxu0 %v255_v16 }
  0xb0   :  { %v66_v17 = vpop.permute.xlu1 %65  ;;  %v31_v37 = vpop.permute.xlu2 %30 }
  0xb1   :  { %v192_v18 = vpop.permute.xlu0 %191  ;;  %v254_v19 = vmul.f32 %v907_v43, %v66_v17  ;;  %v249_v41 = vmul.f32 %v907_v43, %v31_v37 }
  0xb2   :  { %v272_v20 = vmul.f32 %v907_v43, %v192_v18 }
  0xb3   :  { %323 = vmatpush.msra.mxu0 %v254_v19 }
  0xb4   :  { %350 = vmatpush.msra.mxu1 %v272_v20 }
  0xb6   :  { %351 = vmatpush.msra.mxu1 %v271_v22 }
  0xb8   :  { %v178_v24 = vpop.permute.xlu1 %177  ;;  %v300_v56 = vpop.permute.xlu2 %299 }
  0xb9   :  { %v270_v26 = vmul.f32 %v907_v43, %v178_v24  ;;  %v59_v27 = vpop.permute.xlu0 %58  ;;  %v310_v3 = vmul.f32 %v300_v56, %v290_v0 }
  0xba   :  { %v253_v28 = vmul.f32 %v907_v43, %v59_v27 }
  0xbb   :  { %352 = vmatpush.msra.mxu1 %v270_v26 }
  0xbc   :  { %324 = vmatpush.msra.mxu0 %v253_v28 }
  0xbe   :  { %325 = vmatpush.msra.mxu0 %v252_v29  ;;  %v771_v29 = vld [vmem:[%s1120_s2 + $0x20] ss:$0 sm:$0xff] }
  0xc0   :  { %v45_v31 = vpop.permute.xlu1 %44  ;;  %v298_v59 = vpop.permute.xlu2 %297 }
  0xc1   :  { %v171_v32 = vpop.permute.xlu0 %170  ;;  %v251_v33 = vmul.f32 %v907_v43, %v45_v31  ;;  %v309_v61 = vmul.f32 %v298_v59, %v289_v58 }
  0xc2   :  { %v269_v34 = vmul.f32 %v907_v43, %v171_v32 }
  0xc3   :  { %326 = vmatpush.msra.mxu0 %v251_v33 }
  0xc4   :  { %353 = vmatpush.msra.mxu1 %v269_v34 }
  0xc6   :  { %354 = vmatpush.msra.mxu1 %v268_v35 }
  0xc8   :  { %v157_v36 = vpop.permute.xlu1 %156 }
  0xc9   :  { %v267_v38 = vmul.f32 %v907_v43, %v157_v36  ;;  %v38_v39 = vpop.permute.xlu0 %37 }
  0xca   :  { %v250_v40 = vmul.f32 %v907_v43, %v38_v39 }
  0xcb   :  { %355 = vmatpush.msra.mxu1 %v267_v38 }
  0xcc   :  { %327 = vmatpush.msra.mxu0 %v250_v40 }
  0xce   :  { %328 = vmatpush.msra.mxu0 %v249_v41 }
  0xcf   :  { %329 = vmatmul.f32.vlgmr.msra.gmra.mxu0 %v281_v42 }
  0xd0   :  { %v143_v44 = vpop.permute.xlu1 %142 }
  0xd1   :  { %v150_v45 = vpop.permute.xlu0 %149  ;;  %v265_v47 = vmul.f32 %v907_v43, %v143_v44 }
  0xd2   :  { %v266_v46 = vmul.f32 %v907_v43, %v150_v45  ;;  %v285_v43 = vld [vmem:[%s1121_s1 + $0x20] sm:$0xff] }
  0xd4   :  { %356 = vmatpush.msra.mxu1 %v266_v46 }
  0xd6   :  { %357 = vmatpush.msra.mxu1 %v265_v47 }
  0xd7   :  { %358 = vmatmul.f32.vlgmr.msra.gmra.mxu1 %v282_v48  ;;  %332 = vmatmul.f32.gmra.mxu0 %v283_v49 }
  0xd8   :  { %v304_v16 = vpop.permute.xlu1 %303 }
  0xd9   :  { %v302_v9 = vpop.permute.xlu0 %301  ;;  %v312_v19 = vmul.f32 %v304_v16, %v292_v15 }
  0xda   :  { %v311_v13 = vmul.f32 %v302_v9, %v291_v8 }
  0xdf   :  { %361 = vmatmul.f32.gmra.mxu1 %v284_v50  ;;  %335 = vmatmul.f32.gmra.mxu0 %v285_v43 }
  0xe7   :  { %364 = vmatmul.f32.gmra.mxu1 %v286_v51  ;;  %338 = vmatmul.f32.gmra.mxu0 %v287_v52 }
  0xef   :  { %367 = vmatmul.f32.gmra.mxu1 %v288_v53 }
 0x14c   :  { %v330_v60 = vpop.f32.mrf.mxu0 }
 0x14d   :  { %v331_v63 = vadd.f32 %v330_v60, %v309_v61 }
 0x154   :  { %v359_v1 = vpop.f32.mrf.mxu1  ;;  %v333_v2 = vpop.f32.mrf.mxu0 }
 0x155   :  { %v983_v6 = vadd.f32 %v359_v1, %v331_v63  ;;  %v334_v7 = vadd.f32 %v333_v2, %v310_v3 }
 0x157   :  { %743 = vmatmul.msk.f32.vlgmr.msra.gmra.mxu2 %vm376_vm1, %v983_v6 }
 0x15c   :  { %v362_v10 = vpop.f32.mrf.mxu1  ;;  %v336_v11 = vpop.f32.mrf.mxu0 }
 0x15d   :  { %v990_v12 = vadd.f32 %v362_v10, %v334_v7  ;;  %v337_v14 = vadd.f32 %v336_v11, %v311_v13 }
 0x15f   :  { %744 = vmatmul.msk.f32.vlgmr.msra.gmra.mxu3 %vm376_vm1, %v990_v12 }
 0x164   :  { %v365_v17 = vpop.f32.mrf.mxu1  ;;  %v339_v20 = vpop.f32.mrf.mxu0 }
 0x165   :  { %v997_v18 = vadd.f32 %v365_v17, %v337_v14  ;;  %v340_v22 = vadd.f32 %v339_v20, %v312_v19 }
 0x167   :  { %745 = vmatmul.msk.f32.gmra.mxu3 %vm376_vm1, %v997_v18 }
 0x16c   :  { %v368_v23 = vpop.f32.mrf.mxu1 }
 0x16d   :  { %v1001_v24 = vadd.f32 %v368_v23, %v340_v22 }
 0x16f   :  { %746 = vmatmul.msk.f32.gmra.mxu3 %vm376_vm1, %v1001_v24 }
 0x177   :  { %747 = vmatmul.msk.f32.vlgmr.msrb.gmra.mxu3 %vm418_vm2, %v876_v21 }
 0x17f   :  { %748 = vmatmul.msk.f32.gmra.mxu3 %vm418_vm2, %v856_v5 }
 0x187   :  { %749 = vmatmul.msk.f32.gmra.mxu3 %vm418_vm2, %v884_v25 }
 0x18f   :  { %750 = vmatmul.msk.f32.gmra.mxu3 %vm418_vm2, %v851_v4 }
 0x1da   :  { %v406_v30 = vpop.f32.mrf.mxu2 }
 0x1e2   :  { %v409_v26 = vpop.f32.mrf.mxu3 }
 0x1ea   :  { %v412_v27 = vpop.f32.mrf.mxu3 }
 0x1f2   :  { %v415_v28 = vpop.f32.mrf.mxu3 }
 0x1fa   :  { %v444_v31 = vpop.f32.mrf.mxu3 }
 0x1fb   :  { %v445_v32 = vadd.f32 %v444_v31, %v406_v30 }
 0x1fd   :  { %v457_v33 = vadd.f32 %v771_v29, %v445_v32 }
 0x1ff   :  { %773 = vtanh.f32 %v457_v33  ;;  %v751_v49 = vmul.f32 -1.442695, %v457_v33 }
 0x202   :  { %v447_v34 = vpop.f32.mrf.mxu3 }
 0x203   :  { %v448_v35 = vadd.f32 %v447_v34, %v409_v26 }
 0x205   :  { %v774_v36 = vpop.eup %773  ;;  %v458_v37 = vadd.f32 %v771_v29, %v448_v35 }
 0x206   :  { %561 = vrot.lane.b32.xlu0 %v774_v36, %s815_s25 }
 0x207   :  { %775 = vtanh.f32 %v458_v37  ;;  %v752_v51 = vmul.f32 -1.442695, %v458_v37 }
 0x20a   :  { %v450_v38 = vpop.f32.mrf.mxu3 }
 0x20b   :  { %v451_v39 = vadd.f32 %v450_v38, %v412_v27 }
 0x20d   :  { %v776_v40 = vpop.eup %775  ;;  %v459_v41 = vadd.f32 %v771_v29, %v451_v39 }
 0x20e   :  { %563 = vrot.lane.b32.xlu1 %v776_v40, %s815_s25 }
 0x20f   :  { %777 = vtanh.f32 %v459_v41  ;;  %v753_v48 = vmul.f32 -1.442695, %v459_v41 }
 0x212   :  { %v453_v42 = vpop.f32.mrf.mxu3 }
 0x213   :  { %v454_v44 = vadd.f32 %v453_v42, %v415_v28 }
 0x215   :  { %v778_v45 = vpop.eup %777  ;;  %v460_v46 = vadd.f32 %v771_v29, %v454_v44 }
 0x216   :  { %565 = vrot.lane.b32.xlu2 %v778_v45, %s815_s25  ;;  %541 = vrot.lane.b32.xlu1 %v876_v21, %s816_s26 }
 0x217   :  { %779 = vtanh.f32 %v460_v46  ;;  %v754_v59 = vmul.f32 -1.442695, %v460_v46 }
 0x218   :  { %781 = vpow2.f32 %v753_v48 }
 0x219   :  { %783 = vpow2.f32 %v751_v49 }
 0x21d   :  { %v780_v47 = vpop.eup %779 }
 0x21e   :  { %567 = vrot.lane.b32.xlu0 %v780_v47, %s815_s25  ;;  %v782_v50 = vpop.eup %781 }
 0x21f   :  { %v475_v43 = vadd.f32 1.0, %v782_v50  ;;  %v784_v52 = vpop.eup %783 }
 0x220   :  { %v473_v53 = vadd.f32 1.0, %v784_v52 }
 0x221   :  { %785 = vrcp.f32 %v475_v43  ;;  %v518_v0 = vand.u32 2147483648, %v475_v43  ;;  %vm512_vm4 = vweird.f32 %v475_v43  ;;  %v516_v1 = vand.u32 2147483647, %v475_v43 }
 0x222   :  { %787 = vpow2.f32 %v752_v51  ;;  %v488_v17 = vand.u32 2147483648, %v473_v53  ;;  %vm482_vm8 = vweird.f32 %v473_v53  ;;  %v486_v19 = vand.u32 2147483647, %v473_v53 }
 0x223   :  { %789 = vrcp.f32 %v473_v53  ;;  %v519_v9 = vor.u32 1.1754944e-38, %v518_v0  ;;  %vm517_vm6 = vcmp.eq.f32.partialorder %v516_v1, 8.507059e+37 }
 0x224   :  { %v489_v23 = vor.u32 1.1754944e-38, %v488_v17  ;;  %vm487_vm10 = vcmp.eq.f32.partialorder %v486_v19, 8.507059e+37  ;;  %v772_v17 = vld [vmem:[%s1120_s2 + $0x38] ss:$0 sm:$0xff] }
 0x226   :  { %543 = vrot.lane.b32.xlu0 %v856_v5, %s816_s26 }
 0x227   :  { %v786_v54 = vpop.eup %785 }
 0x228   :  { %v788_v21 = vpop.eup %787  ;;  %v508_v55 = vmul.f32 %v786_v54, %v475_v43  ;;  %vm513_vm3 = vweird.f32 %v786_v54 }
 0x229   :  { %v474_v56 = vadd.f32 1.0, %v788_v21  ;;  %v790_v58 = vpop.eup %789  ;;  %vm514_vm5 = vmor %vm512_vm4, %vm513_vm3  ;;  %vm637_vm3 = vcmask 130048   ;;  %vm695_vm4 = vcmask 261248  }
 0x22a   :  { %v509_v57 = vsub.f32 1.0, %v508_v55  ;;  %v478_v60 = vmul.f32 %v790_v58, %v473_v53  ;;  %vm483_vm7 = vweird.f32 %v790_v58 }
 0x22b   :  { %791 = vrcp.f32 %v474_v56  ;;  %vm484_vm9 = vmor %vm482_vm8, %vm483_vm7  ;;  %v503_v31 = vand.u32 2147483648, %v474_v56  ;;  %vm497_vm12 = vweird.f32 %v474_v56  ;;  %v501_v32 = vand.u32 2147483647, %v474_v56 }
 0x22c   :  { %v510_v5 = vmul.f32 %v786_v54, %v509_v57  ;;  %793 = vpow2.f32 %v754_v59  ;;  %v479_v62 = vsub.f32 1.0, %v478_v60 }
 0x22d   :  { %v504_v35 = vor.u32 1.1754944e-38, %v503_v31  ;;  %vm502_vm14 = vcmp.eq.f32.partialorder %v501_v32, 8.507059e+37 }
 0x22e   :  { %v511_v61 = vadd.f32 %v786_v54, %v510_v5  ;;  %v480_v7 = vmul.f32 %v790_v58, %v479_v62 }
 0x230   :  { %v515_v3 = vsel %vm514_vm5, %v786_v54, %v511_v61  ;;  %v481_v15 = vadd.f32 %v790_v58, %v480_v7  ;;  %vm716_vm5 = vcmask 392448  }
 0x231   :  { %v792_v63 = vpop.eup %791  ;;  %v1020_v11 = vsel %vm517_vm6, %v519_v9, %v515_v3  ;;  %vm733_vm6 = vcmask 458112  }
 0x232   :  { %v794_v2 = vpop.eup %793  ;;  %v493_v8 = vmul.f32 %v792_v63, %v474_v56  ;;  %v485_v20 = vsel %vm484_vm9, %v790_v58, %v481_v15  ;;  %vm498_vm11 = vweird.f32 %v792_v63 }
 0x233   :  { %v476_v10 = vadd.f32 1.0, %v794_v2  ;;  %v1024_v27 = vsel %vm487_vm10, %v489_v23, %v485_v20  ;;  %vm499_vm13 = vmor %vm497_vm12, %vm498_vm11 }
 0x234   :  { %v494_v16 = vsub.f32 1.0, %v493_v8 }
 0x235   :  { %795 = vrcp.f32 %v476_v10  ;;  %v533_v42 = vand.u32 2147483648, %v476_v10  ;;  %vm527_vm0 = vweird.f32 %v476_v10  ;;  %v531_v44 = vand.u32 2147483647, %v476_v10 }
 0x236   :  { %v495_v22 = vmul.f32 %v792_v63, %v494_v16 }
 0x237   :  { %v534_v46 = vor.u32 1.1754944e-38, %v533_v42  ;;  %vm532_vm2 = vcmp.eq.f32.partialorder %v531_v44, 8.507059e+37 }
 0x238   :  { %v496_v29 = vadd.f32 %v792_v63, %v495_v22 }
 0x23a   :  { %v500_v33 = vsel %vm499_vm13, %v792_v63, %v496_v29 }
 0x23b   :  { %v796_v30 = vpop.eup %795  ;;  %v505_v37 = vsel %vm502_vm14, %v504_v35, %v500_v33 }
 0x23c   :  { %v523_v34 = vmul.f32 %v796_v30, %v476_v10  ;;  %vm528_vm15 = vweird.f32 %v796_v30 }
 0x23d   :  { %vm529_vm1 = vmor %vm527_vm0, %vm528_vm15 }
 0x23e   :  { %v524_v39 = vsub.f32 1.0, %v523_v34 }
 0x240   :  { %v525_v40 = vmul.f32 %v796_v30, %v524_v39 }
 0x242   :  { %v526_v41 = vadd.f32 %v796_v30, %v525_v40 }
 0x244   :  { %v530_v45 = vsel %vm529_vm1, %v796_v30, %v526_v41 }
 0x245   :  { %v535_v47 = vsel %vm532_vm2, %v534_v46, %v530_v45 }
 0x270   :  { %v566_v13 = vpop.permute.xlu2 %565 }
 0x271   :  { %v575_v14 = vmul.f32 %v566_v13, %v1020_v11 }
 0x273   :  { %585 = vrot.lane.b32.xlu0 %v575_v14, %s817_s27  ;;  %v621_v14 = vld [vmem:[%s1120_s2 + $0x28] sm:$0xff] }
 0x278   :  { %v562_v26 = vpop.permute.xlu0 %561 }
 0x279   :  { %v573_v28 = vmul.f32 %v562_v26, %v1024_v27 }
 0x27b   :  { %581 = vrot.lane.b32.xlu2 %v573_v28, %s817_s27 }
 0x280   :  { %v564_v36 = vpop.permute.xlu1 %563 }
 0x281   :  { %v574_v38 = vmul.f32 %v564_v36, %v505_v37 }
 0x283   :  { %583 = vrot.lane.b32.xlu1 %v574_v38, %s817_s27  ;;  %545 = vrot.lane.b32.xlu2 %v884_v25, %s816_s26 }
 0x288   :  { %v542_v50 = vpop.permute.xlu1 %541 }
 0x289   :  { %v553_v25 = vmul.f32 %v542_v50, %v1024_v27 }
 0x28b   :  { %547 = vrot.lane.b32.xlu1 %v851_v4, %s816_s26 }
 0x290   :  { %v568_v48 = vpop.permute.xlu0 %567 }
 0x291   :  { %v576_v49 = vmul.f32 %v568_v48, %v535_v47 }
 0x293   :  { %587 = vrot.lane.b32.xlu2 %v576_v49, %s817_s27 }
 0x298   :  { %v544_v52 = vpop.permute.xlu0 %543 }
 0x299   :  { %v554_v57 = vmul.f32 %v544_v52, %v505_v37 }
 0x2d5   :  { %v582_v43 = vpop.permute.xlu2 %581 }
 0x2d6   :  { %v593_v51 = vadd.f32 %v582_v43, %v553_v25 }
 0x2d8   :  { %797 = vtanh.f32 %v593_v51 }
 0x2dd   :  { %v546_v4 = vpop.permute.xlu2 %545 }
 0x2de   :  { %v798_v53 = vpop.eup %797  ;;  %v555_v54 = vmul.f32 %v546_v4, %v1020_v11 }
 0x2df   :  { %605 = vrot.lane.b32.xlu0 %v798_v53, %s818_s28 }
 0x2e5   :  { %v586_v21 = vpop.permute.xlu0 %585 }
 0x2e6   :  { %v595_v55 = vadd.f32 %v586_v21, %v555_v54 }
 0x2e8   :  { %799 = vtanh.f32 %v595_v55 }
 0x2ed   :  { %v588_v62 = vpop.permute.xlu2 %587 }
 0x2ee   :  { %v800_v56 = vpop.eup %799 }
 0x2ef   :  { %609 = vrot.lane.b32.xlu2 %v800_v56, %s818_s28 }
 0x2f5   :  { %v584_v58 = vpop.permute.xlu1 %583 }
 0x2f6   :  { %v594_v59 = vadd.f32 %v584_v58, %v554_v57 }
 0x2f8   :  { %801 = vtanh.f32 %v594_v59 }
 0x2fd   :  { %v548_v5 = vpop.permute.xlu1 %547 }
 0x2fe   :  { %v802_v60 = vpop.eup %801  ;;  %v556_v61 = vmul.f32 %v548_v5, %v535_v47 }
 0x2ff   :  { %607 = vrot.lane.b32.xlu1 %v802_v60, %s818_s28 }
 0x300   :  { %v596_v63 = vadd.f32 %v588_v62, %v556_v61 }
 0x302   :  { %803 = vtanh.f32 %v596_v63 }
 0x308   :  { %v804_v0 = vpop.eup %803 }
 0x309   :  { %611 = vrot.lane.b32.xlu0 %v804_v0, %s818_s28 }
 0x349   :  { %v610_v1 = vpop.permute.xlu2 %609 }
 0x34a   :  { %v619_v2 = vmul.f32 %v610_v1, %v1020_v11  ;;  %v622_v11 = vld [vmem:[%s1120_s2 + $0x30] sm:$0xff] }
 0x34b   :  { %660 = vmatpush.msrb.mxu2 %v622_v11 }
 0x34c   :  { %633 = vrot.lane.b32.xlu0 %v619_v2, %s819_s29 }
 0x34d   :  { %661 = vmatpush.msrb.mxu2 %v621_v14 }
 0x351   :  { %v606_v3 = vpop.permute.xlu0 %605 }
 0x352   :  { %v617_v7 = vmul.f32 %v606_v3, %v1024_v27 }
 0x354   :  { %629 = vrot.lane.b32.xlu1 %v617_v7, %s819_s29 }
 0x371   :  { %v608_v8 = vpop.permute.xlu1 %607 }
 0x372   :  { %v618_v9 = vmul.f32 %v608_v8, %v505_v37 }
 0x374   :  { %631 = vrot.lane.b32.xlu2 %v618_v9, %s819_s29  ;;  %685 = vrot.lane.b32.xlu0 %v618_v9, %s815_s25 }
 0x37b   :  { %v612_v10 = vpop.permute.xlu0 %611 }
 0x37c   :  { %v620_v13 = vmul.f32 %v612_v10, %v535_v47  ;;  %683 = vrot.lane.b32.xlu2 %v617_v7, %s815_s25  ;;  %704 = vrot.lane.b32.xlu0 %v593_v51, %s817_s27 }
 0x37e   :  { %635 = vrot.lane.b32.xlu1 %v620_v13, %s819_s29 }
 0x384   :  { %708 = vrot.lane.b32.xlu2 %v595_v55, %s817_s27  ;;  %710 = vrot.lane.b32.xlu0 %v596_v63, %s817_s27 }
 0x386   :  { %687 = vrot.lane.b32.xlu1 %v619_v2, %s815_s25 }
 0x38c   :  { %689 = vrot.lane.b32.xlu2 %v620_v13, %s815_s25  ;;  %725 = vrot.lane.b32.xlu0 %v997_v18, %s820_s30 }
 0x38e   :  { %706 = vrot.lane.b32.xlu1 %v594_v59, %s817_s27 }
 0x394   :  { %723 = vrot.lane.b32.xlu2 %v990_v12, %s820_s30 }
 0x396   :  { %721 = vrot.lane.b32.xlu1 %v983_v6, %s820_s30 }
 0x39e   :  { %727 = vrot.lane.b32.xlu1 %v1001_v24, %s820_s30 }
 0x3be   :  { %v634_v12 = vpop.permute.xlu0 %633 }
 0x3c6   :  { %v630_v18 = vpop.permute.xlu1 %629 }
 0x3c7   :  { %755 = vmatmul.msk.f32.vlgmr.msrb.gmra.mxu2 %vm637_vm3, %v630_v18 }
 0x3ce   :  { %v632_v15 = vpop.permute.xlu2 %631 }
 0x3cf   :  { %756 = vmatmul.msk.f32.gmra.mxu2 %vm637_vm3, %v632_v15 }
 0x3d6   :  { %v684_v24 = vpop.permute.xlu2 %683 }
 0x3d7   :  { %757 = vmatmul.msk.f32.gmra.mxu2 %vm637_vm3, %v634_v12 }
 0x3de   :  { %v709_v20 = vpop.permute.xlu2 %708 }
 0x3e6   :  { %v686_v19 = vpop.permute.xlu0 %685  ;;  %v690_v31 = vpop.permute.xlu2 %689 }
 0x3ee   :  { %v705_v27 = vpop.permute.xlu0 %704  ;;  %v724_v37 = vpop.permute.xlu2 %723 }
 0x3f0   :  { %v636_v6 = vpop.permute.xlu1 %635 }
 0x3f1   :  { %758 = vmatmul.msk.f32.gmra.mxu2 %vm637_vm3, %v636_v6 }
 0x3f6   :  { %v711_v36 = vpop.permute.xlu0 %710 }
 0x3f8   :  { %v688_v16 = vpop.permute.xlu1 %687 }
 0x3fe   :  { %v726_v39 = vpop.permute.xlu0 %725 }
 0x400   :  { %v707_v26 = vpop.permute.xlu1 %706 }
 0x408   :  { %v722_v32 = vpop.permute.xlu1 %721 }
 0x410   :  { %v728_v44 = vpop.permute.xlu1 %727 }
 0x44a   :  { %v663_v22 = vpop.f32.mrf.mxu2 }
 0x44b   :  { %v664_v23 = vadd.f32 %v772_v17, %v663_v22 }
 0x44d   :  { %805 = vtanh.f32 %v664_v23 }
 0x452   :  { %v666_v28 = vpop.f32.mrf.mxu2 }
 0x453   :  { %v806_v29 = vpop.eup %805  ;;  %v667_v30 = vadd.f32 %v772_v17, %v666_v28 }
 0x454   :  { %679 = vst [vmem:[%s1122_s3] sm:$0xff] %v806_v29 }
 0x455   :  { %696 = vst.msk [vmem:[%s1122_s3] sm:$0xff] %vm695_vm4, %v684_v24  ;;  %807 = vtanh.f32 %v667_v30 }
 0x456   :  { %717 = vst.msk [vmem:[%s1122_s3] sm:$0xff] %vm716_vm5, %v705_v27 }
 0x457   :  { %734 = vst.msk [vmem:[%s1122_s3] sm:$0xff] %vm733_vm6, %v722_v32 }
 0x45a   :  { %v669_v33 = vpop.f32.mrf.mxu2 }
 0x45b   :  { %v808_v34 = vpop.eup %807  ;;  %v670_v35 = vadd.f32 %v772_v17, %v669_v33 }
 0x45c   :  { %680 = vst [vmem:[%s1122_s3 + $0x8] sm:$0xff] %v808_v34 }
 0x45d   :  { %697 = vst.msk [vmem:[%s1122_s3 + $0x8] sm:$0xff] %vm695_vm4, %v686_v19  ;;  %809 = vtanh.f32 %v670_v35 }
 0x45e   :  { %718 = vst.msk [vmem:[%s1122_s3 + $0x8] sm:$0xff] %vm716_vm5, %v707_v26 }
 0x45f   :  { %735 = vst.msk [vmem:[%s1122_s3 + $0x8] sm:$0xff] %vm733_vm6, %v724_v37 }
 0x463   :  { %v810_v38 = vpop.eup %809 }
 0x464   :  { %681 = vst [vmem:[%s1122_s3 + $0x10] sm:$0xff] %v810_v38 }
 0x465   :  { %698 = vst.msk [vmem:[%s1122_s3 + $0x10] sm:$0xff] %vm695_vm4, %v688_v16 }
 0x466   :  { %719 = vst.msk [vmem:[%s1122_s3 + $0x10] sm:$0xff] %vm716_vm5, %v709_v20 }
 0x467   :  { %736 = vst.msk [vmem:[%s1122_s3 + $0x10] sm:$0xff] %vm733_vm6, %v726_v39 }
 0x474   :  { %v672_v40 = vpop.f32.mrf.mxu2 }
 0x475   :  { %v673_v41 = vadd.f32 %v772_v17, %v672_v40 }
 0x477   :  { %811 = vtanh.f32 %v673_v41 }
 0x47d   :  { %v812_v42 = vpop.eup %811 }
 0x47e   :  { %682 = vst [vmem:[%s1122_s3 + $0x18] sm:$0xff] %v812_v42 }
 0x47f   :  { %699 = vst.msk [vmem:[%s1122_s3 + $0x18] sm:$0xff] %vm695_vm4, %v690_v31 }
 0x480   :  { %720 = vst.msk [vmem:[%s1122_s3 + $0x18] sm:$0xff] %vm716_vm5, %v711_v36 }
 0x481   :  { %737 = vst.msk [vmem:[%s1122_s3 + $0x18] sm:$0xff] %vm733_vm6, %v728_v44 }

</bundles_post_ra>
